<compile_context>
chip_gen: v5e
topology: v5e:2x2
jax: 0.10.0
libtpu: 0.0.40
codegen_flags: <defaults>
</compile_context>

<pallas_src>
import numpy as np
import jax
import jax.numpy as jnp
from jax import lax
from jax.experimental import pallas as pl
from jax.experimental.pallas import tpu as pltpu

LLR_MAX = 30.0
_SIGN = np.uint32(0x80000000)   # numpy scalars -> jaxpr literals (no captured consts)
_ZERO = np.uint32(0)
_MAX_SEGMENTS = 4               # collapse overly fragmented partial-sum segment lists


# ------------------------- kernel factory (traced, unrolled) -------------------------

def _make_sc_kernel(frozen_ind, info_row, n, out_dtype):
    """Build the unrolled SC kernel for a static frozen pattern.

    frozen_ind: bool np array of length n.
    info_row:   np int array of length n; output row for info positions, -1 for frozen.
    """
    frozen_ind = np.asarray(frozen_ind, dtype=bool)

    # ---- sign-domain helpers (all float/uint32 elementwise VPU work) ----------------
    def f_minsum(x, y):
        # Reference: clip(x), clip(y) -> sign(x)*sign(y)*min(|x|,|y|)
        #          == sign(x)*sign(y)*min(|x|,|y|,LLR_MAX)   (clip preserves sign).
        bx = lax.bitcast_convert_type(x, jnp.uint32)
        by = lax.bitcast_convert_type(y, jnp.uint32)
        sign_bits = (bx ^ by) & _SIGN
        mag = jnp.minimum(jnp.minimum(jnp.abs(x), jnp.abs(y)), LLR_MAX)
        return lax.bitcast_convert_type(
            lax.bitcast_convert_type(mag, jnp.uint32) | sign_bits, jnp.float32)

    # Partial-sum codewords are trace-time lists of (length, mask) segments in
    # codeword order.  mask is a uint32 (length, Bs, 128) slab holding the sign bit
    # (0x80000000 for bit 1, 0 for bit 0), or None meaning "all bits 0 / sign +1".

    def _coalesce(segs):
        out = []
        for seg in segs:
            if out and seg[1] is None and out[-1][1] is None:
                out[-1] = (out[-1][0] + seg[0], None)
            else:
                out.append(seg)
        return out

    def _pack(segs):
        """Cap trace blow-up: collapse long fragmented lists into one mask slab."""
        if len(segs) <= _MAX_SEGMENTS:
            return segs
        shape = next(m.shape for _, m in segs if m is not None)
        parts = [jnp.zeros((l,) + shape[1:], jnp.uint32) if m is None else m
                 for l, m in segs]
        return [(sum(l for l, _ in segs), jnp.concatenate(parts, axis=0))]

    def _seg_xor(a_segs, b_segs):
        """Element-wise XOR of two segment lists covering the same length."""
        a, b, out = list(a_segs), list(b_segs), []

        def take(lst, length):
            seg_len, mask = lst[0]
            if seg_len == length:
                lst.pop(0)
                return mask
            head = None if mask is None else mask[:length]
            lst[0] = (seg_len - length, None if mask is None else mask[length:])
            return head

        while a:
            length = min(a[0][0], b[0][0])
            ma, mb = take(a, length), take(b, length)
            if ma is None:
                seg = (length, mb)
            elif mb is None:
                seg = (length, ma)
            else:
                seg = (length, ma ^ mb)
            out.append(seg)
        assert not b
        return _coalesce(out)

    def _apply_g(segs, x, y):
        """g function: v = s * x + y, with s given as a sign-mask segment list."""
        parts, off = [], 0
        for length, mask in segs:
            xs, ys = x[off:off + length], y[off:off + length]
            if mask is None:                       # sign +1: skip the flip entirely
                parts.append(xs + ys)
            else:
                xs = lax.bitcast_convert_type(
                    lax.bitcast_convert_type(xs, jnp.uint32) ^ mask, jnp.float32)
                parts.append(xs + ys)
            off += length
        return parts[0] if len(parts) == 1 else jnp.concatenate(parts, axis=0)

    # ---- kernel body ------------------------------------------------------------
    def kernel(llr_ref, uhat_ref):
        # forward(): llr_ch = -1.0 * inputs
        llr = -llr_ref[...]                        # (n, Bs, 128) f32

        def decode(llr_node, lo, m, need_cw):
            """Decode the subtree covering code positions [lo, lo+m).
            Writes info-leaf bits (0/1) to their static output rows; returns the
            partial-sum codeword as a segment list (or None if not needed)."""
            fr = frozen_ind[lo:lo + m]
            if fr.all():                           # rate-0 subtree: all bits 0.
                return [(m, None)] if need_cw else None
            if m == 1:                             # info leaf (frozen caught above).
                # ref: u = 0.5*(1-sign(llr)); tie (llr == 0) -> 1   ==   (llr <= 0)
                u_bool = llr_node[0] <= 0.0        # (Bs, 128)
                uhat_ref[int(info_row[lo])] = jnp.where(u_bool, 1.0, 0.0).astype(out_dtype)
                if not need_cw:
                    return None
                return [(1, jnp.where(u_bool, _SIGN, _ZERO)[None])]

            half = m // 2
            left_frozen = bool(fr[:half].all())
            right_frozen = bool(fr[half:].all())
            x, y = llr_node[:half], llr_node[half:]

            if left_frozen:                        # left rate-0: skip f + recursion.
                s_l = [(half, None)]
            else:
                s_l = decode(f_minsum(x, y), lo, half, need_cw or not right_frozen)

            if right_frozen:                       # right rate-0: skip g + recursion.
                s_r = [(half, None)] if need_cw else None
            else:
                v = (x + y) if left_frozen else _apply_g(s_l, x, y)
                s_r = decode(v, lo + half, half, need_cw)

            if not need_cw:
                return None
            # combine: codeword = [s_l XOR s_r, s_r]   (XOR of sign bits)
            return _pack(_coalesce(_seg_xor(s_l, s_r) + list(s_r)))

        decode(llr, 0, n, False)                   # top-level codeword never consumed

    return kernel


# ------------------------------------ wrapper ----------------------------------------

def sc_dec_forward(inputs, frozen_pos, n, output_dtype=jnp.float32, max_block_groups=64):
    """Pallas TPU equivalent of SC_Dec.forward (min-sum f-function, as in the module)."""
    frozen_pos = np.asarray(frozen_pos).reshape(-1).astype(np.int64)
    assert inputs.shape[-1] == n, "Last input dim must be of len n."
    assert inputs.ndim > 1

    frozen_ind = np.zeros(n, dtype=bool)
    frozen_ind[frozen_pos] = True
    info_pos = np.setdiff1d(np.arange(n), frozen_pos)
    k = int(len(info_pos))
    info_row = np.full(n, -1, dtype=np.int64)
    info_row[info_pos] = np.arange(k)

    input_shape = inputs.shape
    out_shape = list(input_shape)
    out_shape[-1] = k
    out_shape[0] = -1

    llr = jnp.asarray(inputs, jnp.float32).reshape(-1, n)
    B = llr.shape[0]
    if k == 0:
        return jnp.zeros(tuple(input_shape[:-1]) + (0,), dtype=output_dtype)

    # --- 3-D lane-dense layout: (code position, 128-lane batch group, lane) ----------
    n_groups = -(-B // 128)

    # Groups per block: biggest that keeps the per-step working set modest, multiple
    # of 8 (or the full extent), and >=2 grid steps when cheap (dual-TC v7x).
    bytes_per_group = n * 128 * 4
    cap = max(1, (8 << 20) // (6 * bytes_per_group))
    bs = min(n_groups, cap, int(max_block_groups))
    if bs >= n_groups:
        bs = n_groups
        if n_groups % 8 == 0 and n_groups >= 16:
            bs = max(8, (n_groups // 2) // 8 * 8)
    else:
        bs = max(8, bs // 8 * 8)
    n_groups_pad = -(-n_groups // bs) * bs
    b_pad = n_groups_pad * 128

    if b_pad != B:
        llr = jnp.pad(llr, ((0, b_pad - B), (0, 0)))
    llr3 = llr.T.reshape(n, n_groups_pad, 128)

    out_itemsize = np.dtype(output_dtype).itemsize
    block_bytes = (n * 4 + k * out_itemsize) * bs * 128
    vmem_limit = int(min(48 << 20, max(16 << 20, 8 * block_bytes)))

    kernel = _make_sc_kernel(frozen_ind, info_row, n, output_dtype)
    u_hat_3d = pl.pallas_call(
        kernel,
        out_shape=jax.ShapeDtypeStruct((k, n_groups_pad, 128), output_dtype),
        grid_spec=pltpu.PrefetchScalarGridSpec(
            num_scalar_prefetch=0,
            grid=(n_groups_pad // bs,),
            in_specs=[pl.BlockSpec((n, bs, 128), lambda i: (0, i, 0))],
            out_specs=pl.BlockSpec((k, bs, 128), lambda i: (0, i, 0)),
        ),
        compiler_params=pltpu.CompilerParams(
            dimension_semantics=("parallel",),
            vmem_limit_bytes=vmem_limit,
        ),
    )(llr3)

    u_hat = u_hat_3d.reshape(k, b_pad)[:, :B].T        # (B, k)
    return u_hat.reshape(out_shape).astype(output_dtype)


# --------------------------------- numpy reference ------------------------------------

def _ref_cn(x, y):
    xi = np.clip(x, -LLR_MAX, LLR_MAX)
    yi = np.clip(y, -LLR_MAX, LLR_MAX)
    return np.sign(xi) * np.sign(yi) * np.minimum(np.abs(xi), np.abs(yi))


def _ref_decode(llr, frozen_ind):
    m = llr.shape[-1]
    if m == 1:
        if frozen_ind[0] == 1:
            u = np.zeros_like(llr)
        else:
            u = 0.5 * (1.0 - np.sign(llr))
            u = np.where(u == 0.5, np.ones_like(u), u)
        return u, [u]
    half = m // 2
    x, y = llr[:, :half], llr[:, half:]
    cw_l, b_l = _ref_decode(_ref_cn(x, y), frozen_ind[:half])
    v = (1.0 - 2.0 * cw_l) * x + y
    cw_r, b_r = _ref_decode(v, frozen_ind[half:])
    cw = np.concatenate([(cw_l != cw_r).astype(llr.dtype), cw_r], axis=-1)
    return cw, b_l + b_r


def sc_dec_reference(inputs, frozen_pos, n):
    frozen_ind = np.zeros(n, dtype=np.int64)
    frozen_ind[np.asarray(frozen_pos)] = 1
    info_pos = np.setdiff1d(np.arange(n), np.asarray(frozen_pos))
    x = np.asarray(inputs, dtype=np.float32)
    llr = -1.0 * x.reshape(-1, n)
    _, bits = _ref_decode(llr, frozen_ind)
    u_hat_n = np.concatenate(bits, axis=-1)
    u_hat = u_hat_n[:, info_pos]
    out_shape = list(x.shape)
    out_shape[-1] = len(info_pos)
    out_shape[0] = -1
    return u_hat.reshape(out_shape)


# ----------------------------------------- main ---------------------------------------

if __name__ == "__main__":
    n = 16                                              # codeword length (power of 2)
    frozen_pos = np.array([0, 1, 2, 3, 4, 5, 8, 9])     # deterministic frozen set, k = 8
    k = n - len(frozen_pos)

    key = jax.random.PRNGKey(0)
    # flattened batch = 2 * 1024 = 2048 -> 16 lane-groups -> 2 parallel grid steps of 8
    x = 4.0 * jax.random.normal(key, (2, 1024, n), dtype=jnp.float32)
    # exercise the tie rule (llr == 0 -> bit 1)
    x = x.at[0, 0, :].set(0.0)

    out = sc_dec_forward(x, frozen_pos, n)
    out = jax.block_until_ready(out)

    ref = sc_dec_reference(np.asarray(x), frozen_pos, n)
    assert out.shape == (2, 1024, k), f"bad output shape {out.shape}"
    np.testing.assert_allclose(np.asarray(out), ref, rtol=0, atol=0)

    print("KERNEL_OK")
</pallas_src>

<mosaic_0001>
module attributes {stable_mosaic.version = 11 : i64} {
  func.func @kernel(%arg0: i32, %arg1: memref<16x8x128xf32, #tpu.memory_space<vmem>>, %arg2: memref<8x8x128xf32, #tpu.memory_space<vmem>>) attributes {dimension_semantics = [#tpu.dimension_semantics<parallel>], iteration_bounds = array<i64: 2>, scalar_prefetch = 0 : i64, scratch_operands = 0 : i64, tpu.core_type = #tpu.core_type<tc>, window_params = [{transform_indices = @transform_0, window_bounds = array<i64: 16, 8, 128>}, {transform_indices = @transform_1, window_bounds = array<i64: 8, 8, 128>}]} {
    %c0 = arith.constant 0 : index
    %c0_0 = arith.constant 0 : index
    %c0_1 = arith.constant 0 : index
    %0 = vector.load %arg1[%c0, %c0_0, %c0_1] : memref<16x8x128xf32, #tpu.memory_space<vmem>>, vector<16x8x128xf32>
    %cst = arith.constant 0.000000e+00 : f32
    %1 = vector.broadcast %cst : f32 to vector<16x8x128xf32>
    %2 = arith.subf %1, %0 : vector<16x8x128xf32>
    %3 = vector.extract_strided_slice %2 {offsets = [0, 0, 0], sizes = [8, 8, 128], strides = [1, 1, 1]} : vector<16x8x128xf32> to vector<8x8x128xf32>
    %4 = vector.extract_strided_slice %2 {offsets = [8, 0, 0], sizes = [8, 8, 128], strides = [1, 1, 1]} : vector<16x8x128xf32> to vector<8x8x128xf32>
    %5 = tpu.bitcast %3 : vector<8x8x128xf32> -> vector<8x8x128xi32>
    %6 = tpu.bitcast %4 : vector<8x8x128xf32> -> vector<8x8x128xi32>
    %7 = arith.xori %5, %6 : vector<8x8x128xi32>
    %c-2147483648_i32 = arith.constant -2147483648 : i32
    %8 = vector.broadcast %c-2147483648_i32 : i32 to vector<8x8x128xi32>
    %9 = arith.andi %7, %8 : vector<8x8x128xi32>
    %10 = math.absf %3 : vector<8x8x128xf32>
    %11 = math.absf %4 : vector<8x8x128xf32>
    %12 = arith.minimumf %10, %11 : vector<8x8x128xf32>
    %cst_2 = arith.constant 3.000000e+01 : f32
    %13 = vector.broadcast %cst_2 : f32 to vector<8x8x128xf32>
    %14 = arith.minimumf %12, %13 : vector<8x8x128xf32>
    %15 = tpu.bitcast %14 : vector<8x8x128xf32> -> vector<8x8x128xi32>
    %16 = arith.ori %15, %9 : vector<8x8x128xi32>
    %17 = tpu.bitcast %16 : vector<8x8x128xi32> -> vector<8x8x128xf32>
    %18 = vector.extract_strided_slice %17 {offsets = [0, 0, 0], sizes = [4, 8, 128], strides = [1, 1, 1]} : vector<8x8x128xf32> to vector<4x8x128xf32>
    %19 = vector.extract_strided_slice %17 {offsets = [4, 0, 0], sizes = [4, 8, 128], strides = [1, 1, 1]} : vector<8x8x128xf32> to vector<4x8x128xf32>
    %20 = arith.addf %18, %19 : vector<4x8x128xf32>
    %21 = vector.extract_strided_slice %20 {offsets = [0, 0, 0], sizes = [2, 8, 128], strides = [1, 1, 1]} : vector<4x8x128xf32> to vector<2x8x128xf32>
    %22 = vector.extract_strided_slice %20 {offsets = [2, 0, 0], sizes = [2, 8, 128], strides = [1, 1, 1]} : vector<4x8x128xf32> to vector<2x8x128xf32>
    %23 = arith.addf %21, %22 : vector<2x8x128xf32>
    %24 = vector.extract_strided_slice %23 {offsets = [0, 0, 0], sizes = [1, 8, 128], strides = [1, 1, 1]} : vector<2x8x128xf32> to vector<1x8x128xf32>
    %25 = vector.extract_strided_slice %23 {offsets = [1, 0, 0], sizes = [1, 8, 128], strides = [1, 1, 1]} : vector<2x8x128xf32> to vector<1x8x128xf32>
    %26 = tpu.bitcast %24 : vector<1x8x128xf32> -> vector<1x8x128xi32>
    %27 = tpu.bitcast %25 : vector<1x8x128xf32> -> vector<1x8x128xi32>
    %28 = arith.xori %26, %27 : vector<1x8x128xi32>
    %c-2147483648_i32_3 = arith.constant -2147483648 : i32
    %29 = vector.broadcast %c-2147483648_i32_3 : i32 to vector<1x8x128xi32>
    %30 = arith.andi %28, %29 : vector<1x8x128xi32>
    %31 = math.absf %24 : vector<1x8x128xf32>
    %32 = math.absf %25 : vector<1x8x128xf32>
    %33 = arith.minimumf %31, %32 : vector<1x8x128xf32>
    %cst_4 = arith.constant 3.000000e+01 : f32
    %34 = vector.broadcast %cst_4 : f32 to vector<1x8x128xf32>
    %35 = arith.minimumf %33, %34 : vector<1x8x128xf32>
    %36 = tpu.bitcast %35 : vector<1x8x128xf32> -> vector<1x8x128xi32>
    %37 = arith.ori %36, %30 : vector<1x8x128xi32>
    %38 = tpu.bitcast %37 : vector<1x8x128xi32> -> vector<1x8x128xf32>
    %39 = vector.shape_cast %38 : vector<1x8x128xf32> to vector<8x128xf32>
    %cst_5 = arith.constant 0.000000e+00 : f32
    %40 = vector.broadcast %cst_5 : f32 to vector<8x128xf32>
    %41 = arith.cmpf ole, %39, %40 : vector<8x128xf32>
    %cst_6 = arith.constant 1.000000e+00 : f32
    %cst_7 = arith.constant 0.000000e+00 : f32
    %42 = vector.broadcast %cst_6 : f32 to vector<8x128xf32>
    %43 = vector.broadcast %cst_7 : f32 to vector<8x128xf32>
    %44 = arith.select %41, %42, %43 : vector<8x128xi1>, vector<8x128xf32>
    %c0_8 = arith.constant 0 : index
    %c0_9 = arith.constant 0 : index
    %c0_10 = arith.constant 0 : index
    %45 = vector.load %arg2[%c0_8, %c0_9, %c0_10] : memref<8x8x128xf32, #tpu.memory_space<vmem>>, vector<1x8x128xf32>
    %46 = vector.shape_cast %45 : vector<1x8x128xf32> to vector<8x128xf32>
    %47 = vector.shape_cast %44 : vector<8x128xf32> to vector<1x8x128xf32>
    tpu.vector_store %arg2[%c0_8, %c0_9, %c0_10], %47 {strides = array<i32>} : memref<8x8x128xf32, #tpu.memory_space<vmem>>, vector<1x8x128xf32>,
    %c-2147483648_i32_11 = arith.constant -2147483648 : i32
    %c0_i32 = arith.constant 0 : i32
    %48 = vector.broadcast %c-2147483648_i32_11 : i32 to vector<8x128xi32>
    %49 = vector.broadcast %c0_i32 : i32 to vector<8x128xi32>
    %50 = arith.select %41, %48, %49 : vector<8x128xi1>, vector<8x128xi32>
    %51 = vector.shape_cast %50 : vector<8x128xi32> to vector<1x8x128xi32>
    %52 = tpu.bitcast %24 : vector<1x8x128xf32> -> vector<1x8x128xi32>
    %53 = arith.xori %52, %51 : vector<1x8x128xi32>
    %54 = tpu.bitcast %53 : vector<1x8x128xi32> -> vector<1x8x128xf32>
    %55 = arith.addf %54, %25 : vector<1x8x128xf32>
    %56 = vector.shape_cast %55 : vector<1x8x128xf32> to vector<8x128xf32>
    %cst_12 = arith.constant 0.000000e+00 : f32
    %57 = vector.broadcast %cst_12 : f32 to vector<8x128xf32>
    %58 = arith.cmpf ole, %56, %57 : vector<8x128xf32>
    %cst_13 = arith.constant 1.000000e+00 : f32
    %cst_14 = arith.constant 0.000000e+00 : f32
    %59 = vector.broadcast %cst_13 : f32 to vector<8x128xf32>
    %60 = vector.broadcast %cst_14 : f32 to vector<8x128xf32>
    %61 = arith.select %58, %59, %60 : vector<8x128xi1>, vector<8x128xf32>
    %c1 = arith.constant 1 : index
    %c0_15 = arith.constant 0 : index
    %c0_16 = arith.constant 0 : index
    %62 = vector.load %arg2[%c1, %c0_15, %c0_16] : memref<8x8x128xf32, #tpu.memory_space<vmem>>, vector<1x8x128xf32>
    %63 = vector.shape_cast %62 : vector<1x8x128xf32> to vector<8x128xf32>
    %64 = vector.shape_cast %61 : vector<8x128xf32> to vector<1x8x128xf32>
    tpu.vector_store %arg2[%c1, %c0_15, %c0_16], %64 {strides = array<i32>} : memref<8x8x128xf32, #tpu.memory_space<vmem>>, vector<1x8x128xf32>,
    %c-2147483648_i32_17 = arith.constant -2147483648 : i32
    %c0_i32_18 = arith.constant 0 : i32
    %65 = vector.broadcast %c-2147483648_i32_17 : i32 to vector<8x128xi32>
    %66 = vector.broadcast %c0_i32_18 : i32 to vector<8x128xi32>
    %67 = arith.select %58, %65, %66 : vector<8x128xi1>, vector<8x128xi32>
    %68 = vector.shape_cast %67 : vector<8x128xi32> to vector<1x8x128xi32>
    %69 = arith.xori %51, %68 : vector<1x8x128xi32>
    %70 = tpu.concatenate %69, %68, %69, %68, %69, %68, %69, %68 in 0 : vector<1x8x128xi32>, vector<1x8x128xi32>, vector<1x8x128xi32>, vector<1x8x128xi32>, vector<1x8x128xi32>, vector<1x8x128xi32>, vector<1x8x128xi32>, vector<1x8x128xi32> -> vector<8x8x128xi32>
    %71 = tpu.bitcast %3 : vector<8x8x128xf32> -> vector<8x8x128xi32>
    %72 = arith.xori %71, %70 : vector<8x8x128xi32>
    %73 = tpu.bitcast %72 : vector<8x8x128xi32> -> vector<8x8x128xf32>
    %74 = arith.addf %73, %4 : vector<8x8x128xf32>
    %75 = vector.extract_strided_slice %74 {offsets = [0, 0, 0], sizes = [4, 8, 128], strides = [1, 1, 1]} : vector<8x8x128xf32> to vector<4x8x128xf32>
    %76 = vector.extract_strided_slice %74 {offsets = [4, 0, 0], sizes = [4, 8, 128], strides = [1, 1, 1]} : vector<8x8x128xf32> to vector<4x8x128xf32>
    %77 = tpu.bitcast %75 : vector<4x8x128xf32> -> vector<4x8x128xi32>
    %78 = tpu.bitcast %76 : vector<4x8x128xf32> -> vector<4x8x128xi32>
    %79 = arith.xori %77, %78 : vector<4x8x128xi32>
    %c-2147483648_i32_19 = arith.constant -2147483648 : i32
    %80 = vector.broadcast %c-2147483648_i32_19 : i32 to vector<4x8x128xi32>
    %81 = arith.andi %79, %80 : vector<4x8x128xi32>
    %82 = math.absf %75 : vector<4x8x128xf32>
    %83 = math.absf %76 : vector<4x8x128xf32>
    %84 = arith.minimumf %82, %83 : vector<4x8x128xf32>
    %cst_20 = arith.constant 3.000000e+01 : f32
    %85 = vector.broadcast %cst_20 : f32 to vector<4x8x128xf32>
    %86 = arith.minimumf %84, %85 : vector<4x8x128xf32>
    %87 = tpu.bitcast %86 : vector<4x8x128xf32> -> vector<4x8x128xi32>
    %88 = arith.ori %87, %81 : vector<4x8x128xi32>
    %89 = tpu.bitcast %88 : vector<4x8x128xi32> -> vector<4x8x128xf32>
    %90 = vector.extract_strided_slice %89 {offsets = [0, 0, 0], sizes = [2, 8, 128], strides = [1, 1, 1]} : vector<4x8x128xf32> to vector<2x8x128xf32>
    %91 = vector.extract_strided_slice %89 {offsets = [2, 0, 0], sizes = [2, 8, 128], strides = [1, 1, 1]} : vector<4x8x128xf32> to vector<2x8x128xf32>
    %92 = arith.addf %90, %91 : vector<2x8x128xf32>
    %93 = vector.extract_strided_slice %92 {offsets = [0, 0, 0], sizes = [1, 8, 128], strides = [1, 1, 1]} : vector<2x8x128xf32> to vector<1x8x128xf32>
    %94 = vector.extract_strided_slice %92 {offsets = [1, 0, 0], sizes = [1, 8, 128], strides = [1, 1, 1]} : vector<2x8x128xf32> to vector<1x8x128xf32>
    %95 = tpu.bitcast %93 : vector<1x8x128xf32> -> vector<1x8x128xi32>
    %96 = tpu.bitcast %94 : vector<1x8x128xf32> -> vector<1x8x128xi32>
    %97 = arith.xori %95, %96 : vector<1x8x128xi32>
    %c-2147483648_i32_21 = arith.constant -2147483648 : i32
    %98 = vector.broadcast %c-2147483648_i32_21 : i32 to vector<1x8x128xi32>
    %99 = arith.andi %97, %98 : vector<1x8x128xi32>
    %100 = math.absf %93 : vector<1x8x128xf32>
    %101 = math.absf %94 : vector<1x8x128xf32>
    %102 = arith.minimumf %100, %101 : vector<1x8x128xf32>
    %cst_22 = arith.constant 3.000000e+01 : f32
    %103 = vector.broadcast %cst_22 : f32 to vector<1x8x128xf32>
    %104 = arith.minimumf %102, %103 : vector<1x8x128xf32>
    %105 = tpu.bitcast %104 : vector<1x8x128xf32> -> vector<1x8x128xi32>
    %106 = arith.ori %105, %99 : vector<1x8x128xi32>
    %107 = tpu.bitcast %106 : vector<1x8x128xi32> -> vector<1x8x128xf32>
    %108 = vector.shape_cast %107 : vector<1x8x128xf32> to vector<8x128xf32>
    %cst_23 = arith.constant 0.000000e+00 : f32
    %109 = vector.broadcast %cst_23 : f32 to vector<8x128xf32>
    %110 = arith.cmpf ole, %108, %109 : vector<8x128xf32>
    %cst_24 = arith.constant 1.000000e+00 : f32
    %cst_25 = arith.constant 0.000000e+00 : f32
    %111 = vector.broadcast %cst_24 : f32 to vector<8x128xf32>
    %112 = vector.broadcast %cst_25 : f32 to vector<8x128xf32>
    %113 = arith.select %110, %111, %112 : vector<8x128xi1>, vector<8x128xf32>
    %c2 = arith.constant 2 : index
    %c0_26 = arith.constant 0 : index
    %c0_27 = arith.constant 0 : index
    %114 = vector.load %arg2[%c2, %c0_26, %c0_27] : memref<8x8x128xf32, #tpu.memory_space<vmem>>, vector<1x8x128xf32>
    %115 = vector.shape_cast %114 : vector<1x8x128xf32> to vector<8x128xf32>
    %116 = vector.shape_cast %113 : vector<8x128xf32> to vector<1x8x128xf32>
    tpu.vector_store %arg2[%c2, %c0_26, %c0_27], %116 {strides = array<i32>} : memref<8x8x128xf32, #tpu.memory_space<vmem>>, vector<1x8x128xf32>,
    %c-2147483648_i32_28 = arith.constant -2147483648 : i32
    %c0_i32_29 = arith.constant 0 : i32
    %117 = vector.broadcast %c-2147483648_i32_28 : i32 to vector<8x128xi32>
    %118 = vector.broadcast %c0_i32_29 : i32 to vector<8x128xi32>
    %119 = arith.select %110, %117, %118 : vector<8x128xi1>, vector<8x128xi32>
    %120 = vector.shape_cast %119 : vector<8x128xi32> to vector<1x8x128xi32>
    %121 = tpu.bitcast %93 : vector<1x8x128xf32> -> vector<1x8x128xi32>
    %122 = arith.xori %121, %120 : vector<1x8x128xi32>
    %123 = tpu.bitcast %122 : vector<1x8x128xi32> -> vector<1x8x128xf32>
    %124 = arith.addf %123, %94 : vector<1x8x128xf32>
    %125 = vector.shape_cast %124 : vector<1x8x128xf32> to vector<8x128xf32>
    %cst_30 = arith.constant 0.000000e+00 : f32
    %126 = vector.broadcast %cst_30 : f32 to vector<8x128xf32>
    %127 = arith.cmpf ole, %125, %126 : vector<8x128xf32>
    %cst_31 = arith.constant 1.000000e+00 : f32
    %cst_32 = arith.constant 0.000000e+00 : f32
    %128 = vector.broadcast %cst_31 : f32 to vector<8x128xf32>
    %129 = vector.broadcast %cst_32 : f32 to vector<8x128xf32>
    %130 = arith.select %127, %128, %129 : vector<8x128xi1>, vector<8x128xf32>
    %c3 = arith.constant 3 : index
    %c0_33 = arith.constant 0 : index
    %c0_34 = arith.constant 0 : index
    %131 = vector.load %arg2[%c3, %c0_33, %c0_34] : memref<8x8x128xf32, #tpu.memory_space<vmem>>, vector<1x8x128xf32>
    %132 = vector.shape_cast %131 : vector<1x8x128xf32> to vector<8x128xf32>
    %133 = vector.shape_cast %130 : vector<8x128xf32> to vector<1x8x128xf32>
    tpu.vector_store %arg2[%c3, %c0_33, %c0_34], %133 {strides = array<i32>} : memref<8x8x128xf32, #tpu.memory_space<vmem>>, vector<1x8x128xf32>,
    %c-2147483648_i32_35 = arith.constant -2147483648 : i32
    %c0_i32_36 = arith.constant 0 : i32
    %134 = vector.broadcast %c-2147483648_i32_35 : i32 to vector<8x128xi32>
    %135 = vector.broadcast %c0_i32_36 : i32 to vector<8x128xi32>
    %136 = arith.select %127, %134, %135 : vector<8x128xi1>, vector<8x128xi32>
    %137 = vector.shape_cast %136 : vector<8x128xi32> to vector<1x8x128xi32>
    %138 = arith.xori %120, %137 : vector<1x8x128xi32>
    %139 = vector.extract_strided_slice %75 {offsets = [0, 0, 0], sizes = [1, 8, 128], strides = [1, 1, 1]} : vector<4x8x128xf32> to vector<1x8x128xf32>
    %140 = vector.extract_strided_slice %76 {offsets = [0, 0, 0], sizes = [1, 8, 128], strides = [1, 1, 1]} : vector<4x8x128xf32> to vector<1x8x128xf32>
    %141 = tpu.bitcast %139 : vector<1x8x128xf32> -> vector<1x8x128xi32>
    %142 = arith.xori %141, %138 : vector<1x8x128xi32>
    %143 = tpu.bitcast %142 : vector<1x8x128xi32> -> vector<1x8x128xf32>
    %144 = arith.addf %143, %140 : vector<1x8x128xf32>
    %145 = vector.extract_strided_slice %75 {offsets = [1, 0, 0], sizes = [1, 8, 128], strides = [1, 1, 1]} : vector<4x8x128xf32> to vector<1x8x128xf32>
    %146 = vector.extract_strided_slice %76 {offsets = [1, 0, 0], sizes = [1, 8, 128], strides = [1, 1, 1]} : vector<4x8x128xf32> to vector<1x8x128xf32>
    %147 = tpu.bitcast %145 : vector<1x8x128xf32> -> vector<1x8x128xi32>
    %148 = arith.xori %147, %137 : vector<1x8x128xi32>
    %149 = tpu.bitcast %148 : vector<1x8x128xi32> -> vector<1x8x128xf32>
    %150 = arith.addf %149, %146 : vector<1x8x128xf32>
    %151 = vector.extract_strided_slice %75 {offsets = [2, 0, 0], sizes = [1, 8, 128], strides = [1, 1, 1]} : vector<4x8x128xf32> to vector<1x8x128xf32>
    %152 = vector.extract_strided_slice %76 {offsets = [2, 0, 0], sizes = [1, 8, 128], strides = [1, 1, 1]} : vector<4x8x128xf32> to vector<1x8x128xf32>
    %153 = tpu.bitcast %151 : vector<1x8x128xf32> -> vector<1x8x128xi32>
    %154 = arith.xori %153, %138 : vector<1x8x128xi32>
    %155 = tpu.bitcast %154 : vector<1x8x128xi32> -> vector<1x8x128xf32>
    %156 = arith.addf %155, %152 : vector<1x8x128xf32>
    %157 = vector.extract_strided_slice %75 {offsets = [3, 0, 0], sizes = [1, 8, 128], strides = [1, 1, 1]} : vector<4x8x128xf32> to vector<1x8x128xf32>
    %158 = vector.extract_strided_slice %76 {offsets = [3, 0, 0], sizes = [1, 8, 128], strides = [1, 1, 1]} : vector<4x8x128xf32> to vector<1x8x128xf32>
    %159 = tpu.bitcast %157 : vector<1x8x128xf32> -> vector<1x8x128xi32>
    %160 = arith.xori %159, %137 : vector<1x8x128xi32>
    %161 = tpu.bitcast %160 : vector<1x8x128xi32> -> vector<1x8x128xf32>
    %162 = arith.addf %161, %158 : vector<1x8x128xf32>
    %163 = tpu.concatenate %144, %150, %156, %162 in 0 : vector<1x8x128xf32>, vector<1x8x128xf32>, vector<1x8x128xf32>, vector<1x8x128xf32> -> vector<4x8x128xf32>
    %164 = vector.extract_strided_slice %163 {offsets = [0, 0, 0], sizes = [2, 8, 128], strides = [1, 1, 1]} : vector<4x8x128xf32> to vector<2x8x128xf32>
    %165 = vector.extract_strided_slice %163 {offsets = [2, 0, 0], sizes = [2, 8, 128], strides = [1, 1, 1]} : vector<4x8x128xf32> to vector<2x8x128xf32>
    %166 = tpu.bitcast %164 : vector<2x8x128xf32> -> vector<2x8x128xi32>
    %167 = tpu.bitcast %165 : vector<2x8x128xf32> -> vector<2x8x128xi32>
    %168 = arith.xori %166, %167 : vector<2x8x128xi32>
    %c-2147483648_i32_37 = arith.constant -2147483648 : i32
    %169 = vector.broadcast %c-2147483648_i32_37 : i32 to vector<2x8x128xi32>
    %170 = arith.andi %168, %169 : vector<2x8x128xi32>
    %171 = math.absf %164 : vector<2x8x128xf32>
    %172 = math.absf %165 : vector<2x8x128xf32>
    %173 = arith.minimumf %171, %172 : vector<2x8x128xf32>
    %cst_38 = arith.constant 3.000000e+01 : f32
    %174 = vector.broadcast %cst_38 : f32 to vector<2x8x128xf32>
    %175 = arith.minimumf %173, %174 : vector<2x8x128xf32>
    %176 = tpu.bitcast %175 : vector<2x8x128xf32> -> vector<2x8x128xi32>
    %177 = arith.ori %176, %170 : vector<2x8x128xi32>
    %178 = tpu.bitcast %177 : vector<2x8x128xi32> -> vector<2x8x128xf32>
    %179 = vector.extract_strided_slice %178 {offsets = [0, 0, 0], sizes = [1, 8, 128], strides = [1, 1, 1]} : vector<2x8x128xf32> to vector<1x8x128xf32>
    %180 = vector.extract_strided_slice %178 {offsets = [1, 0, 0], sizes = [1, 8, 128], strides = [1, 1, 1]} : vector<2x8x128xf32> to vector<1x8x128xf32>
    %181 = tpu.bitcast %179 : vector<1x8x128xf32> -> vector<1x8x128xi32>
    %182 = tpu.bitcast %180 : vector<1x8x128xf32> -> vector<1x8x128xi32>
    %183 = arith.xori %181, %182 : vector<1x8x128xi32>
    %c-2147483648_i32_39 = arith.constant -2147483648 : i32
    %184 = vector.broadcast %c-2147483648_i32_39 : i32 to vector<1x8x128xi32>
    %185 = arith.andi %183, %184 : vector<1x8x128xi32>
    %186 = math.absf %179 : vector<1x8x128xf32>
    %187 = math.absf %180 : vector<1x8x128xf32>
    %188 = arith.minimumf %186, %187 : vector<1x8x128xf32>
    %cst_40 = arith.constant 3.000000e+01 : f32
    %189 = vector.broadcast %cst_40 : f32 to vector<1x8x128xf32>
    %190 = arith.minimumf %188, %189 : vector<1x8x128xf32>
    %191 = tpu.bitcast %190 : vector<1x8x128xf32> -> vector<1x8x128xi32>
    %192 = arith.ori %191, %185 : vector<1x8x128xi32>
    %193 = tpu.bitcast %192 : vector<1x8x128xi32> -> vector<1x8x128xf32>
    %194 = vector.shape_cast %193 : vector<1x8x128xf32> to vector<8x128xf32>
    %cst_41 = arith.constant 0.000000e+00 : f32
    %195 = vector.broadcast %cst_41 : f32 to vector<8x128xf32>
    %196 = arith.cmpf ole, %194, %195 : vector<8x128xf32>
    %cst_42 = arith.constant 1.000000e+00 : f32
    %cst_43 = arith.constant 0.000000e+00 : f32
    %197 = vector.broadcast %cst_42 : f32 to vector<8x128xf32>
    %198 = vector.broadcast %cst_43 : f32 to vector<8x128xf32>
    %199 = arith.select %196, %197, %198 : vector<8x128xi1>, vector<8x128xf32>
    %c4 = arith.constant 4 : index
    %c0_44 = arith.constant 0 : index
    %c0_45 = arith.constant 0 : index
    %200 = vector.load %arg2[%c4, %c0_44, %c0_45] : memref<8x8x128xf32, #tpu.memory_space<vmem>>, vector<1x8x128xf32>
    %201 = vector.shape_cast %200 : vector<1x8x128xf32> to vector<8x128xf32>
    %202 = vector.shape_cast %199 : vector<8x128xf32> to vector<1x8x128xf32>
    tpu.vector_store %arg2[%c4, %c0_44, %c0_45], %202 {strides = array<i32>} : memref<8x8x128xf32, #tpu.memory_space<vmem>>, vector<1x8x128xf32>,
    %c-2147483648_i32_46 = arith.constant -2147483648 : i32
    %c0_i32_47 = arith.constant 0 : i32
    %203 = vector.broadcast %c-2147483648_i32_46 : i32 to vector<8x128xi32>
    %204 = vector.broadcast %c0_i32_47 : i32 to vector<8x128xi32>
    %205 = arith.select %196, %203, %204 : vector<8x128xi1>, vector<8x128xi32>
    %206 = vector.shape_cast %205 : vector<8x128xi32> to vector<1x8x128xi32>
    %207 = tpu.bitcast %179 : vector<1x8x128xf32> -> vector<1x8x128xi32>
    %208 = arith.xori %207, %206 : vector<1x8x128xi32>
    %209 = tpu.bitcast %208 : vector<1x8x128xi32> -> vector<1x8x128xf32>
    %210 = arith.addf %209, %180 : vector<1x8x128xf32>
    %211 = vector.shape_cast %210 : vector<1x8x128xf32> to vector<8x128xf32>
    %cst_48 = arith.constant 0.000000e+00 : f32
    %212 = vector.broadcast %cst_48 : f32 to vector<8x128xf32>
    %213 = arith.cmpf ole, %211, %212 : vector<8x128xf32>
    %cst_49 = arith.constant 1.000000e+00 : f32
    %cst_50 = arith.constant 0.000000e+00 : f32
    %214 = vector.broadcast %cst_49 : f32 to vector<8x128xf32>
    %215 = vector.broadcast %cst_50 : f32 to vector<8x128xf32>
    %216 = arith.select %213, %214, %215 : vector<8x128xi1>, vector<8x128xf32>
    %c5 = arith.constant 5 : index
    %c0_51 = arith.constant 0 : index
    %c0_52 = arith.constant 0 : index
    %217 = vector.load %arg2[%c5, %c0_51, %c0_52] : memref<8x8x128xf32, #tpu.memory_space<vmem>>, vector<1x8x128xf32>
    %218 = vector.shape_cast %217 : vector<1x8x128xf32> to vector<8x128xf32>
    %219 = vector.shape_cast %216 : vector<8x128xf32> to vector<1x8x128xf32>
    tpu.vector_store %arg2[%c5, %c0_51, %c0_52], %219 {strides = array<i32>} : memref<8x8x128xf32, #tpu.memory_space<vmem>>, vector<1x8x128xf32>,
    %c-2147483648_i32_53 = arith.constant -2147483648 : i32
    %c0_i32_54 = arith.constant 0 : i32
    %220 = vector.broadcast %c-2147483648_i32_53 : i32 to vector<8x128xi32>
    %221 = vector.broadcast %c0_i32_54 : i32 to vector<8x128xi32>
    %222 = arith.select %213, %220, %221 : vector<8x128xi1>, vector<8x128xi32>
    %223 = vector.shape_cast %222 : vector<8x128xi32> to vector<1x8x128xi32>
    %224 = arith.xori %206, %223 : vector<1x8x128xi32>
    %225 = vector.extract_strided_slice %164 {offsets = [0, 0, 0], sizes = [1, 8, 128], strides = [1, 1, 1]} : vector<2x8x128xf32> to vector<1x8x128xf32>
    %226 = vector.extract_strided_slice %165 {offsets = [0, 0, 0], sizes = [1, 8, 128], strides = [1, 1, 1]} : vector<2x8x128xf32> to vector<1x8x128xf32>
    %227 = tpu.bitcast %225 : vector<1x8x128xf32> -> vector<1x8x128xi32>
    %228 = arith.xori %227, %224 : vector<1x8x128xi32>
    %229 = tpu.bitcast %228 : vector<1x8x128xi32> -> vector<1x8x128xf32>
    %230 = arith.addf %229, %226 : vector<1x8x128xf32>
    %231 = vector.extract_strided_slice %164 {offsets = [1, 0, 0], sizes = [1, 8, 128], strides = [1, 1, 1]} : vector<2x8x128xf32> to vector<1x8x128xf32>
    %232 = vector.extract_strided_slice %165 {offsets = [1, 0, 0], sizes = [1, 8, 128], strides = [1, 1, 1]} : vector<2x8x128xf32> to vector<1x8x128xf32>
    %233 = tpu.bitcast %231 : vector<1x8x128xf32> -> vector<1x8x128xi32>
    %234 = arith.xori %233, %223 : vector<1x8x128xi32>
    %235 = tpu.bitcast %234 : vector<1x8x128xi32> -> vector<1x8x128xf32>
    %236 = arith.addf %235, %232 : vector<1x8x128xf32>
    %237 = tpu.concatenate %230, %236 in 0 : vector<1x8x128xf32>, vector<1x8x128xf32> -> vector<2x8x128xf32>
    %238 = vector.extract_strided_slice %237 {offsets = [0, 0, 0], sizes = [1, 8, 128], strides = [1, 1, 1]} : vector<2x8x128xf32> to vector<1x8x128xf32>
    %239 = vector.extract_strided_slice %237 {offsets = [1, 0, 0], sizes = [1, 8, 128], strides = [1, 1, 1]} : vector<2x8x128xf32> to vector<1x8x128xf32>
    %240 = tpu.bitcast %238 : vector<1x8x128xf32> -> vector<1x8x128xi32>
    %241 = tpu.bitcast %239 : vector<1x8x128xf32> -> vector<1x8x128xi32>
    %242 = arith.xori %240, %241 : vector<1x8x128xi32>
    %c-2147483648_i32_55 = arith.constant -2147483648 : i32
    %243 = vector.broadcast %c-2147483648_i32_55 : i32 to vector<1x8x128xi32>
    %244 = arith.andi %242, %243 : vector<1x8x128xi32>
    %245 = math.absf %238 : vector<1x8x128xf32>
    %246 = math.absf %239 : vector<1x8x128xf32>
    %247 = arith.minimumf %245, %246 : vector<1x8x128xf32>
    %cst_56 = arith.constant 3.000000e+01 : f32
    %248 = vector.broadcast %cst_56 : f32 to vector<1x8x128xf32>
    %249 = arith.minimumf %247, %248 : vector<1x8x128xf32>
    %250 = tpu.bitcast %249 : vector<1x8x128xf32> -> vector<1x8x128xi32>
    %251 = arith.ori %250, %244 : vector<1x8x128xi32>
    %252 = tpu.bitcast %251 : vector<1x8x128xi32> -> vector<1x8x128xf32>
    %253 = vector.shape_cast %252 : vector<1x8x128xf32> to vector<8x128xf32>
    %cst_57 = arith.constant 0.000000e+00 : f32
    %254 = vector.broadcast %cst_57 : f32 to vector<8x128xf32>
    %255 = arith.cmpf ole, %253, %254 : vector<8x128xf32>
    %cst_58 = arith.constant 1.000000e+00 : f32
    %cst_59 = arith.constant 0.000000e+00 : f32
    %256 = vector.broadcast %cst_58 : f32 to vector<8x128xf32>
    %257 = vector.broadcast %cst_59 : f32 to vector<8x128xf32>
    %258 = arith.select %255, %256, %257 : vector<8x128xi1>, vector<8x128xf32>
    %c6 = arith.constant 6 : index
    %c0_60 = arith.constant 0 : index
    %c0_61 = arith.constant 0 : index
    %259 = vector.load %arg2[%c6, %c0_60, %c0_61] : memref<8x8x128xf32, #tpu.memory_space<vmem>>, vector<1x8x128xf32>
    %260 = vector.shape_cast %259 : vector<1x8x128xf32> to vector<8x128xf32>
    %261 = vector.shape_cast %258 : vector<8x128xf32> to vector<1x8x128xf32>
    tpu.vector_store %arg2[%c6, %c0_60, %c0_61], %261 {strides = array<i32>} : memref<8x8x128xf32, #tpu.memory_space<vmem>>, vector<1x8x128xf32>,
    %c-2147483648_i32_62 = arith.constant -2147483648 : i32
    %c0_i32_63 = arith.constant 0 : i32
    %262 = vector.broadcast %c-2147483648_i32_62 : i32 to vector<8x128xi32>
    %263 = vector.broadcast %c0_i32_63 : i32 to vector<8x128xi32>
    %264 = arith.select %255, %262, %263 : vector<8x128xi1>, vector<8x128xi32>
    %265 = vector.shape_cast %264 : vector<8x128xi32> to vector<1x8x128xi32>
    %266 = tpu.bitcast %238 : vector<1x8x128xf32> -> vector<1x8x128xi32>
    %267 = arith.xori %266, %265 : vector<1x8x128xi32>
    %268 = tpu.bitcast %267 : vector<1x8x128xi32> -> vector<1x8x128xf32>
    %269 = arith.addf %268, %239 : vector<1x8x128xf32>
    %270 = vector.shape_cast %269 : vector<1x8x128xf32> to vector<8x128xf32>
    %cst_64 = arith.constant 0.000000e+00 : f32
    %271 = vector.broadcast %cst_64 : f32 to vector<8x128xf32>
    %272 = arith.cmpf ole, %270, %271 : vector<8x128xf32>
    %cst_65 = arith.constant 1.000000e+00 : f32
    %cst_66 = arith.constant 0.000000e+00 : f32
    %273 = vector.broadcast %cst_65 : f32 to vector<8x128xf32>
    %274 = vector.broadcast %cst_66 : f32 to vector<8x128xf32>
    %275 = arith.select %272, %273, %274 : vector<8x128xi1>, vector<8x128xf32>
    %c7 = arith.constant 7 : index
    %c0_67 = arith.constant 0 : index
    %c0_68 = arith.constant 0 : index
    %276 = vector.load %arg2[%c7, %c0_67, %c0_68] : memref<8x8x128xf32, #tpu.memory_space<vmem>>, vector<1x8x128xf32>
    %277 = vector.shape_cast %276 : vector<1x8x128xf32> to vector<8x128xf32>
    %278 = vector.shape_cast %275 : vector<8x128xf32> to vector<1x8x128xf32>
    tpu.vector_store %arg2[%c7, %c0_67, %c0_68], %278 {strides = array<i32>} : memref<8x8x128xf32, #tpu.memory_space<vmem>>, vector<1x8x128xf32>,
    return
  }
  func.func @transform_0(%arg0: i32) -> (i32, i32, i32) {
    %c0_i32 = arith.constant 0 : i32
    %c0_i32_0 = arith.constant 0 : i32
    %c0_i32_1 = arith.constant 0 : i32
    return %c0_i32, %arg0, %c0_i32_0 : i32, i32, i32
  }
  func.func @transform_1(%arg0: i32) -> (i32, i32, i32) {
    %c0_i32 = arith.constant 0 : i32
    %c0_i32_0 = arith.constant 0 : i32
    %c0_i32_1 = arith.constant 0 : i32
    return %c0_i32, %arg0, %c0_i32_0 : i32, i32, i32
  }
}

</mosaic_0001>

<bundles_post_ra>
// kernel: tpu_custom_call.1
= control target key start
LH: loop header
LB: loop body
LE: loop exit
PB: predicated region body
PF: predicated region fallthrough
CT: control target
= control target key end

     0   :  { %6 = vsyncpa [#allocation3], 0  ;;  %s976_s0 = inlined_call_operand.hbm [shape: f32[16,16,128], index: 0, kind: input, shape index: {}]   ;;  %s977_s1 = inlined_call_operand.hbm [shape: f32[8,16,128], index: 1, kind: output, shape index: {}]  }
   0x1   :  { %8 = vsyncpa [#allocation3 + $0x1], 0 }
   0x2   :  { %9 = vsyncpa [#allocation4], 0 }
   0x3   :  { %11 = vsyncpa [#allocation4 + $0x1], 0  ;;  %s744_s6 = smov 0   ;;  %s746_s7 = smov 0  }
   0x4   :  { %s748_s8 = smov 0   ;;  %s750_s9 = smov 0  }
   0x5 LB: > { %s765_s10 = sadd.s32 4294967295, %s724_s9   ;;  %s555_s11 = sadd.s32 4294967294, %s724_s9   ;;  %s724_s9 = sphi %s750_s9, %s986_s9   ;;  %s720_s8 = sphi %s748_s8, %s985_s8   ;;  %s716_s7 = sphi %s746_s7, %s984_s7   ;;  %s712_s6 = sphi %s744_s6, %s983_s6  }
   0x6   : > { %s769_s12 = sadd.s32 1, %s724_s9   ;;  %s24_s13 = sadd.s32 1, %s720_s8 }
   0x7   : > { %s21_s14 = ssub.s32 %s724_s9, %s769_s12  ;;  %p31_p0 = scmp.ne.s32.totalorder %s720_s8, %s716_s7 }
   0x8   : > { %p22_p1 = scmp.eq.s32.totalorder %s21_s14, 0  ;;  %p32_p2 = scmp.eq.s32.totalorder %s724_s9, 0 }
   0x9   : > { %p37_p3 = scmp.ne.s32.totalorder %s716_s7, %s712_s6  ;;  %p38_p4 = scmp.eq.s32.totalorder %s765_s10, 0 }
   0xa   : > { %s781_s15 = scalar_select %p22_p1, %s720_s8, %s24_s13  }
   0xb   : > { %p783_p5 = por %p32_p2, %p31_p0  ;;  %p787_p6 = por %p38_p4, %p37_p3 }
   0xc   : > { %p61_p7 = scmp.eq.s32.totalorder %s765_s10, 1  ;;  %p67_p8 = scmp.eq.s32.totalorder %s555_s11, 1 }
   0xd   : > { %p557_p9 = scmp.ge.s32.totalorder %s724_s9, 2  ;;  %p586_p10 = scmp.lt.s32.totalorder %s724_s9, 2 }
   0xe   : > { %p794_p11 = por %p61_p7, %p31_p0  ;;  %p798_p12 = por %p67_p8, %p37_p3 }
   0xf   : > { %s87_s20 = sand.u32 1, %s720_s8   ;;  %s559_s21 = sshll.u32 %s724_s9, 3 }
  0x10   : > { %s558_s22 = sshll.u32 %s87_s20, 7  ;;  %s95_s25 = scalar_lea.hbm %s976_s0, %s559_s21 }
  0x11   : > { %s96_s26 = sshll.u32 %s95_s25, 4  ;;  %s91_s27 = scalar_lea.vmem [#allocation2], %s558_s22  ;;  %s97_s26 = int_to_ptr.hbm [resolvable:$true] %s96_s26 }
  0x12   : > { %s98_s28 = sshll.u32 %s91_s27, 4  ;;  %p809_p13 = pnand %p586_p10, %p783_p5  ;;  %s99_s28 = int_to_ptr.vmem [resolvable:$true] %s98_s28 }
  0x13   : > { %p560_p0 = scmp.ge.s32.totalorder %s724_s9, 1  ;;  %s88_s30 = scalar_lea.sflag [#allocation3], %s87_s20 }
  0x14   : > { %s628_s2 = sshra.s32 %s97_s26, 4  ;;  %p632_p2 = pneg %p809_p13  ;;  %s629_s2 = int_to_ptr.hbm [resolvable:$true] %s628_s2 }
  0x15   : > { %s630_s3 = scalar_lea.hbm %s629_s2, 128  ;;  %s635_s11 = scalar_lea.hbm %s976_s0, 256 }
  0x16   : > { %p631_p1 = scmp.ne.s32.totalorder %s629_s2, %s630_s3  ;;  %p636_p5 = scmp.lt.s32.totalorder %s629_s2, %s976_s0 }
  0x17   : > { %p637_p7 = scmp.lt.s32.totalorder %s635_s11, %s630_s3 }
  0x18   : > { %p633_p3 = pnand %p632_p2, %p631_p1 }
  0x19   : > { %p638_p8 = por %p637_p7, %p636_p5 }
  0x1a   : > { %p634_p4 = pneg %p633_p3 }
  0x1c   : > { %p639_p10 = pnand %p638_p8, %p634_p4 }
  0x1e   : > { %642 = shalt.err (!%p639_p10)
}
  0x1f   : > { %s726_s16 = smov 256   ;;  %s727_s20 = smov 128  }
  0x20   : > { %s728_s21 = smov 8   ;;  %p106_p1 = scmp.lt.s32.totalorder %s724_s9, 3 }
  0x21   : > { %581 = dma.hbm_to_vmem [thread:$0]  (!%p809_p13), %s97_s26, 2048, %s99_s28, %s88_s30, %s726_s16, %s727_s20, %s728_s21  }
  0x22   : > { %p107_p2 = pnand %p560_p0, %p106_p1 }
  0x23   : > { %s828_s22 = sand.u32 (!%p107_p2), 1, %s716_s7  }
  0x24   : > { %110 = sbr.rel (%p107_p2) target bundleno = 176 (0xb0), region = 24  ;;  %s561_s23 = sshll.u32 (!%p107_p2), %s828_s22, 7 }
  0x25   : > { %s113_s24 = scalar_lea.sflag (!%p107_p2), [#allocation3], %s828_s22  ;;  %s116_s25 = scalar_lea.vmem (!%p107_p2), [#allocation2], %s561_s23 }
  0x29   : > { %703 = dma.done.wait (%p787_p6), %s113_s24, 2048  }
  0x2a   : > { %705 = vsyncadd (%p787_p6), %s113_s24, 4294965248  ;;  %v136_v0 = vld [vmem:[%s116_s25] sm:$0xff]  ;;  %v137_v1 = vld [vmem:[%s116_s25 + $0x8] sm:$0xff]  ;;  %s562_s17 = sshll.u32 %s828_s22, 6  ;;  %s571_s27 = sshll.u32 %s765_s10, 3 }
  0x2b   : > { %v138_v2 = vld [vmem:[%s116_s25 + $0x10] sm:$0xff]  ;;  %v139_v3 = vld [vmem:[%s116_s25 + $0x18] sm:$0xff]  ;;  %v140_v4 = vld [vmem:[%s116_s25 + $0x20] sm:$0xff]  ;;  %v836_v6 = vsub.f32 0.0, %v136_v0  ;;  %v838_v7 = vsub.f32 0.0, %v137_v1  ;;  %s903_s26 = scalar_lea.vmem [#allocation5], %s562_s17  ;;  %s478_s30 = scalar_lea.hbm %s977_s1, %s571_s27 }
  0x2c   : > { %v141_v5 = vld [vmem:[%s116_s25 + $0x28] sm:$0xff]  ;;  %v840_v8 = vsub.f32 0.0, %v138_v2  ;;  %v142_v9 = vld [vmem:[%s116_s25 + $0x30] sm:$0xff]  ;;  %v143_v10 = vld [vmem:[%s116_s25 + $0x38] sm:$0xff]  ;;  %v842_v12 = vsub.f32 0.0, %v139_v3  ;;  %v844_v13 = vsub.f32 0.0, %v140_v4 }
  0x2d   : > { %v144_v11 = vld [vmem:[%s116_s25 + $0x40] sm:$0xff]  ;;  %v846_v14 = vsub.f32 0.0, %v141_v5  ;;  %v145_v15 = vld [vmem:[%s116_s25 + $0x48] sm:$0xff]  ;;  %v146_v16 = vld [vmem:[%s116_s25 + $0x50] sm:$0xff]  ;;  %v848_v18 = vsub.f32 0.0, %v142_v9  ;;  %v850_v19 = vsub.f32 0.0, %v143_v10 }
  0x2e   : > { %v147_v17 = vld [vmem:[%s116_s25 + $0x58] sm:$0xff]  ;;  %v852_v20 = vsub.f32 0.0, %v144_v11  ;;  %v148_v21 = vld [vmem:[%s116_s25 + $0x60] sm:$0xff]  ;;  %v149_v22 = vld [vmem:[%s116_s25 + $0x68] sm:$0xff]  ;;  %v854_v24 = vsub.f32 0.0, %v145_v15  ;;  %v856_v25 = vsub.f32 0.0, %v146_v16 }
  0x2f   : > { %v150_v23 = vld [vmem:[%s116_s25 + $0x70] sm:$0xff]  ;;  %v858_v26 = vsub.f32 0.0, %v147_v17  ;;  %v151_v27 = vld [vmem:[%s116_s25 + $0x78] sm:$0xff]  ;;  %v860_v28 = vsub.f32 0.0, %v148_v21  ;;  %v862_v29 = vsub.f32 0.0, %v149_v22  ;;  %s479_s2 = sshll.u32 %s903_s26, 4  ;;  %s480_s2 = int_to_ptr.vmem [resolvable:$true] %s479_s2 }
  0x30   : > { %v864_v30 = vsub.f32 0.0, %v150_v23  ;;  %v184_v31 = vxor.u32 %v852_v20, %v836_v6  ;;  %v868_v32 = vsub.f32 0.0, %v151_v27  ;;  %v185_v33 = vxor.u32 %v854_v24, %v838_v7  ;;  %s481_s3 = sshll.u32 %s478_s30, 4  ;;  %s468_s10 = scalar_lea.sflag [#allocation4], %s828_s22  ;;  %s482_s3 = int_to_ptr.hbm [resolvable:$true] %s481_s3 }
  0x31   : > { %v186_v34 = vxor.u32 %v856_v25, %v840_v8  ;;  %v187_v35 = vxor.u32 %v858_v26, %v842_v12  ;;  %v188_v36 = vxor.u32 %v860_v28, %v844_v13  ;;  %v189_v37 = vxor.u32 %v862_v29, %v846_v14  ;;  %s672_s4 = sshra.s32 %s482_s3, 4  ;;  %s678_s14 = scalar_lea.hbm %s977_s1, 128  ;;  %s673_s4 = int_to_ptr.hbm [resolvable:$true] %s672_s4 }
  0x32   : > { %v190_v38 = vxor.u32 %v864_v30, %v848_v18  ;;  %v191_v39 = vxor.u32 %v868_v32, %v850_v19  ;;  %v192_v40 = vand.u32 2147483648, %v184_v31  ;;  %v193_v41 = vand.u32 2147483648, %v185_v33  ;;  %s674_s5 = scalar_lea.hbm %s673_s4, 64  ;;  %p679_p3 = scmp.lt.s32.totalorder %s673_s4, %s977_s1 }
  0x33   : > { %v194_v42 = vand.u32 2147483648, %v186_v34  ;;  %v195_v43 = vand.u32 2147483648, %v187_v35  ;;  %v196_v44 = vand.u32 2147483648, %v188_v36  ;;  %v197_v45 = vand.u32 2147483648, %v189_v37  ;;  %p675_p6 = scmp.ne.s32.totalorder %s673_s4, %s674_s5  ;;  %p680_p4 = scmp.lt.s32.totalorder %s678_s14, %s674_s5 }
  0x34   : > { %v200_v46 = vand.u32 2147483647, %v836_v6  ;;  %v198_v47 = vand.u32 2147483648, %v190_v38  ;;  %v199_v48 = vand.u32 2147483648, %v191_v39  ;;  %v201_v49 = vand.u32 2147483647, %v838_v7 }
  0x35   : > { %v202_v50 = vand.u32 2147483647, %v840_v8  ;;  %v203_v51 = vand.u32 2147483647, %v842_v12  ;;  %v204_v52 = vand.u32 2147483647, %v844_v13  ;;  %p676_p13 = pnand %p675_p6, %p794_p11  ;;  %p681_p5 = por %p680_p4, %p679_p3 }
  0x36   : > { %v205_v53 = vand.u32 2147483647, %v846_v14  ;;  %v206_v54 = vand.u32 2147483647, %v848_v18  ;;  %v207_v55 = vand.u32 2147483647, %v850_v19 }
  0x37   : > { %v208_v56 = vand.u32 2147483647, %v852_v20  ;;  %v209_v57 = vand.u32 2147483647, %v854_v24  ;;  %v210_v58 = vand.u32 2147483647, %v856_v25  ;;  %p677_p0 = pneg %p676_p13 }
  0x38   : > { %v211_v59 = vand.u32 2147483647, %v858_v26  ;;  %v212_v60 = vand.u32 2147483647, %v860_v28  ;;  %v213_v61 = vand.u32 2147483647, %v862_v29 }
  0x39   : > { %v214_v62 = vand.u32 2147483647, %v864_v30  ;;  %v216_v63 = vmin.f32 %v200_v46, %v208_v56  ;;  %v215_v0 = vand.u32 2147483647, %v868_v32  ;;  %v217_v1 = vmin.f32 %v201_v49, %v209_v57  ;;  %p682_p7 = pnand %p681_p5, %p677_p0 }
  0x3a   : > { %v218_v2 = vmin.f32 %v202_v50, %v210_v58  ;;  %v219_v3 = vmin.f32 %v203_v51, %v211_v59  ;;  %v220_v4 = vmin.f32 %v204_v52, %v212_v60  ;;  %v221_v5 = vmin.f32 %v205_v53, %v213_v61 }
  0x3b   : > { %v222_v9 = vmin.f32 %v206_v54, %v214_v62  ;;  %v224_v10 = vmin.f32 %v216_v63, 30.0  ;;  %v223_v11 = vmin.f32 %v207_v55, %v215_v0  ;;  %v225_v15 = vmin.f32 %v217_v1, 30.0 }
  0x3c   : > { %v226_v16 = vmin.f32 %v218_v2, 30.0  ;;  %v227_v17 = vmin.f32 %v219_v3, 30.0  ;;  %v228_v21 = vmin.f32 %v220_v4, 30.0  ;;  %v229_v22 = vmin.f32 %v221_v5, 30.0 }
  0x3d   : > { %v230_v23 = vmin.f32 %v222_v9, 30.0  ;;  %v240_v27 = vor.u32 %v224_v10, %v192_v40  ;;  %v231_v31 = vmin.f32 %v223_v11, 30.0  ;;  %v241_v33 = vor.u32 %v225_v15, %v193_v41 }
  0x3e   : > { %v242_v34 = vor.u32 %v226_v16, %v194_v42  ;;  %v243_v35 = vor.u32 %v227_v17, %v195_v43  ;;  %v244_v36 = vor.u32 %v228_v21, %v196_v44  ;;  %v245_v37 = vor.u32 %v229_v22, %v197_v45 }
  0x3f   : > { %v246_v38 = vor.u32 %v230_v23, %v198_v47  ;;  %v247_v39 = vor.u32 %v231_v31, %v199_v48  ;;  %v729_v43 = vmov 0.0   ;;  %v730_v45 = vmov 0  }
  0x40   : > { %v256_v46 = vadd.f32 %v244_v36, %v240_v27  ;;  %v257_v49 = vadd.f32 %v245_v37, %v241_v33 }
  0x41   : > { %v258_v50 = vadd.f32 %v246_v38, %v242_v34  ;;  %v259_v51 = vadd.f32 %v247_v39, %v243_v35 }
  0x43   : > { %v260_v52 = vadd.f32 %v258_v50, %v256_v46  ;;  %v261_v53 = vadd.f32 %v259_v51, %v257_v49 }
  0x45   : > { %v266_v54 = vand.u32 2147483647, %v260_v52  ;;  %v264_v55 = vxor.u32 %v261_v53, %v260_v52  ;;  %v267_v56 = vand.u32 2147483647, %v261_v53 }
  0x47   : > { %v265_v57 = vand.u32 2147483648, %v264_v55  ;;  %v268_v40 = vmin.f32 %v266_v54, %v267_v56 }
  0x49   : > { %v269_v41 = vmin.f32 %v268_v40, 30.0 }
  0x4b   : > { %v271_v42 = vor.u32 %v269_v41, %v265_v57 }
  0x4d   : > { %vm273_vm0 = vcmp.le.f32.partialorder %v271_v42, 0.0 }
  0x4e   : > { %v274_v44 = vsel %vm273_vm0, 1.0, %v729_v43  ;;  %v276_v47 = vsel %vm273_vm0, 2147483648, %v730_v45 }
  0x4f   : > { %275 = vst [vmem:[%s903_s26] sm:$0xff] %v274_v44  ;;  %v277_v48 = vxor.u32 %v276_v47, %v260_v52 }
  0x51   : > { %v279_v58 = vadd.f32 %v277_v48, %v261_v53 }
  0x53   : > { %vm280_vm1 = vcmp.le.f32.partialorder %v279_v58, 0.0 }
  0x54   : > { %v281_v59 = vsel %vm280_vm1, 1.0, %v729_v43  ;;  %v284_v60 = vsel %vm280_vm1, 2147483648, %v730_v45 }
  0x55   : > { %563 = vst [vmem:[%s903_s26 + $0x8] sm:$0xff] %v281_v59  ;;  %v285_v61 = vxor.u32 %v284_v60, %v276_v47  ;;  %v287_v62 = vxor.u32 %v284_v60, %v838_v7  ;;  %v289_v63 = vxor.u32 %v284_v60, %v842_v12  ;;  %v291_v0 = vxor.u32 %v284_v60, %v846_v14 }
  0x56   : > { %v293_v1 = vxor.u32 %v284_v60, %v850_v19 }
  0x57   : > { %v286_v2 = vxor.u32 %v285_v61, %v836_v6  ;;  %v288_v3 = vxor.u32 %v285_v61, %v840_v8  ;;  %v290_v4 = vxor.u32 %v285_v61, %v844_v13  ;;  %v292_v5 = vxor.u32 %v285_v61, %v848_v18 }
  0x58   : > { %v303_v9 = vadd.f32 %v287_v62, %v854_v24  ;;  %v305_v10 = vadd.f32 %v289_v63, %v858_v26  ;;  %v307_v7 = vadd.f32 %v291_v0, %v862_v29  ;;  %v309_v12 = vadd.f32 %v293_v1, %v868_v32 }
  0x59   : > { %v302_v14 = vadd.f32 %v286_v2, %v852_v20  ;;  %v304_v19 = vadd.f32 %v288_v3, %v856_v25  ;;  %v306_v6 = vadd.f32 %v290_v4, %v860_v28  ;;  %v308_v8 = vadd.f32 %v292_v5, %v864_v30 }
  0x5a   : > { %v327_v11 = vand.u32 2147483647, %v303_v9  ;;  %v329_v13 = vand.u32 2147483647, %v305_v10  ;;  %v331_v15 = vand.u32 2147483647, %v307_v7  ;;  %v319_v18 = vxor.u32 %v307_v7, %v303_v9 }
  0x5b   : > { %v333_v16 = vand.u32 2147483647, %v309_v12  ;;  %v318_v24 = vxor.u32 %v306_v6, %v302_v14  ;;  %v320_v17 = vxor.u32 %v308_v8, %v304_v19  ;;  %v321_v26 = vxor.u32 %v309_v12, %v305_v10 }
  0x5c   : > { %v323_v21 = vand.u32 2147483648, %v319_v18  ;;  %v326_v29 = vand.u32 2147483647, %v302_v14  ;;  %v328_v22 = vand.u32 2147483647, %v304_v19  ;;  %v335_v32 = vmin.f32 %v327_v11, %v331_v15 }
  0x5d   : > { %v330_v23 = vand.u32 2147483647, %v306_v6  ;;  %v325_v20 = vand.u32 2147483648, %v321_v26  ;;  %v332_v27 = vand.u32 2147483647, %v308_v8  ;;  %v337_v25 = vmin.f32 %v329_v13, %v333_v16 }
  0x5e   : > { %v339_v31 = vmin.f32 %v335_v32, 30.0  ;;  %v322_v28 = vand.u32 2147483648, %v318_v24  ;;  %v324_v30 = vand.u32 2147483648, %v320_v17 }
  0x5f   : > { %v334_v33 = vmin.f32 %v326_v29, %v330_v23  ;;  %v336_v34 = vmin.f32 %v328_v22, %v332_v27  ;;  %v341_v35 = vmin.f32 %v337_v25, 30.0 }
  0x60   : > { %v347_v36 = vor.u32 %v339_v31, %v323_v21 }
  0x61   : > { %v338_v37 = vmin.f32 %v334_v33, 30.0  ;;  %v340_v38 = vmin.f32 %v336_v34, 30.0  ;;  %v349_v39 = vor.u32 %v341_v35, %v325_v20 }
  0x63   : > { %v346_v46 = vor.u32 %v338_v37, %v322_v28  ;;  %v348_v49 = vor.u32 %v340_v38, %v324_v30  ;;  %v355_v50 = vadd.f32 %v349_v39, %v347_v36 }
  0x65   : > { %v354_v51 = vadd.f32 %v348_v49, %v346_v46  ;;  %v361_v52 = vand.u32 2147483647, %v355_v50 }
  0x67   : > { %v358_v53 = vxor.u32 %v355_v50, %v354_v51  ;;  %v360_v54 = vand.u32 2147483647, %v354_v51 }
  0x69   : > { %v359_v55 = vand.u32 2147483648, %v358_v53  ;;  %v362_v56 = vmin.f32 %v360_v54, %v361_v52 }
  0x6b   : > { %v363_v57 = vmin.f32 %v362_v56, 30.0 }
  0x6d   : > { %v365_v40 = vor.u32 %v363_v57, %v359_v55 }
  0x6f   : > { %vm367_vm2 = vcmp.le.f32.partialorder %v365_v40, 0.0 }
  0x70   : > { %v368_v41 = vsel %vm367_vm2, 1.0, %v729_v43  ;;  %v371_v42 = vsel %vm367_vm2, 2147483648, %v730_v45 }
  0x71   : > { %564 = vst [vmem:[%s903_s26 + $0x10] sm:$0xff] %v368_v41  ;;  %v372_v44 = vxor.u32 %v371_v42, %v354_v51 }
  0x73   : > { %v374_v47 = vadd.f32 %v372_v44, %v355_v50 }
  0x75   : > { %vm375_vm3 = vcmp.le.f32.partialorder %v374_v47, 0.0 }
  0x76   : > { %v376_v48 = vsel %vm375_vm3, 1.0, %v729_v43  ;;  %v379_v58 = vsel %vm375_vm3, 2147483648, %v730_v45 }
  0x77   : > { %565 = vst [vmem:[%s903_s26 + $0x18] sm:$0xff] %v376_v48  ;;  %v380_v59 = vxor.u32 %v379_v58, %v371_v42  ;;  %v384_v60 = vxor.u32 %v379_v58, %v303_v9  ;;  %v390_v61 = vxor.u32 %v379_v58, %v305_v10 }
  0x79   : > { %v381_v62 = vxor.u32 %v380_v59, %v302_v14  ;;  %v386_v63 = vadd.f32 %v384_v60, %v307_v7  ;;  %v387_v0 = vxor.u32 %v380_v59, %v304_v19  ;;  %v392_v1 = vadd.f32 %v390_v61, %v309_v12 }
  0x7b   : > { %v383_v2 = vadd.f32 %v381_v62, %v306_v6  ;;  %v389_v3 = vadd.f32 %v387_v0, %v308_v8  ;;  %v398_v4 = vxor.u32 %v392_v1, %v386_v63  ;;  %v402_v5 = vand.u32 2147483647, %v386_v63 }
  0x7c   : > { %v404_v11 = vand.u32 2147483647, %v392_v1 }
  0x7d   : > { %v397_v13 = vxor.u32 %v389_v3, %v383_v2  ;;  %v401_v15 = vand.u32 2147483647, %v383_v2  ;;  %v403_v18 = vand.u32 2147483647, %v389_v3  ;;  %v400_v16 = vand.u32 2147483648, %v398_v4 }
  0x7e   : > { %v406_v24 = vmin.f32 %v402_v5, %v404_v11 }
  0x7f   : > { %v399_v17 = vand.u32 2147483648, %v397_v13  ;;  %v405_v26 = vmin.f32 %v401_v15, %v403_v18 }
  0x80   : > { %v408_v21 = vmin.f32 %v406_v24, 30.0 }
  0x81   : > { %v407_v9 = vmin.f32 %v405_v26, 30.0 }
  0x82   : > { %v412_v10 = vor.u32 %v408_v21, %v400_v16 }
  0x83   : > { %v411_v14 = vor.u32 %v407_v9, %v399_v17 }
  0x84   : > { %v418_v7 = vand.u32 2147483647, %v412_v10 }
  0x85   : > { %v415_v12 = vxor.u32 %v412_v10, %v411_v14  ;;  %v417_v19 = vand.u32 2147483647, %v411_v14 }
  0x87   : > { %v416_v6 = vand.u32 2147483648, %v415_v12  ;;  %v419_v8 = vmin.f32 %v417_v19, %v418_v7 }
  0x89   : > { %v420_v29 = vmin.f32 %v419_v8, 30.0 }
  0x8b   : > { %v422_v22 = vor.u32 %v420_v29, %v416_v6 }
  0x8d   : > { %vm424_vm4 = vcmp.le.f32.partialorder %v422_v22, 0.0 }
  0x8e   : > { %v425_v32 = vsel %vm424_vm4, 1.0, %v729_v43  ;;  %v428_v23 = vsel %vm424_vm4, 2147483648, %v730_v45 }
  0x8f   : > { %566 = vst [vmem:[%s903_s26 + $0x20] sm:$0xff] %v425_v32  ;;  %v429_v20 = vxor.u32 %v428_v23, %v411_v14 }
  0x91   : > { %v431_v27 = vadd.f32 %v429_v20, %v412_v10 }
  0x93   : > { %vm432_vm5 = vcmp.le.f32.partialorder %v431_v27, 0.0 }
  0x94   : > { %v433_v25 = vsel %vm432_vm5, 1.0, %v729_v43  ;;  %v436_v31 = vsel %vm432_vm5, 2147483648, %v730_v45 }
  0x95   : > { %567 = vst [vmem:[%s903_s26 + $0x28] sm:$0xff] %v433_v25  ;;  %v437_v28 = vxor.u32 %v436_v31, %v428_v23  ;;  %v441_v33 = vxor.u32 %v436_v31, %v386_v63 }
  0x97   : > { %v438_v30 = vxor.u32 %v437_v28, %v383_v2  ;;  %v443_v34 = vadd.f32 %v441_v33, %v392_v1 }
  0x99   : > { %v440_v35 = vadd.f32 %v438_v30, %v389_v3  ;;  %v449_v36 = vand.u32 2147483647, %v443_v34 }
  0x9b   : > { %v446_v37 = vxor.u32 %v443_v34, %v440_v35  ;;  %v448_v38 = vand.u32 2147483647, %v440_v35 }
  0x9d   : > { %v447_v39 = vand.u32 2147483648, %v446_v37  ;;  %v450_v46 = vmin.f32 %v448_v38, %v449_v36 }
  0x9f   : > { %v451_v49 = vmin.f32 %v450_v46, 30.0 }
  0xa1   : > { %v453_v50 = vor.u32 %v451_v49, %v447_v39 }
  0xa3   : > { %vm455_vm6 = vcmp.le.f32.partialorder %v453_v50, 0.0 }
  0xa4   : > { %v456_v51 = vsel %vm455_vm6, 1.0, %v729_v43  ;;  %v459_v52 = vsel %vm455_vm6, 2147483648, %v730_v45 }
  0xa5   : > { %568 = vst [vmem:[%s903_s26 + $0x30] sm:$0xff] %v456_v51  ;;  %v460_v53 = vxor.u32 %v459_v52, %v440_v35 }
  0xa7   : > { %v462_v54 = vadd.f32 %v460_v53, %v443_v34 }
  0xa9   : > { %vm463_vm7 = vcmp.le.f32.partialorder %v462_v54, 0.0 }
  0xaa   : > { %v464_v55 = vsel %vm463_vm7, 1.0, %v729_v43 }
  0xab   : > { %569 = vst [vmem:[%s903_s26 + $0x38] sm:$0xff] %v464_v55 }
  0xac   : > { %685 = shalt.err (!%p682_p7)
}
  0xad   : > { %s731_s21 = smov 128   ;;  %s732_s22 = smov 256  }
  0xae   : > { %s733_s23 = smov 8  }
  0xaf   : > { %576 = dma.vmem_to_hbm [thread:$0]  (%p794_p11), %s480_s2, 1024, %s482_s3, %s468_s10, %s731_s21, %s732_s22, %s733_s23  }
  0xb0 PF: > { %s496_s24 = sand.u32 1, %s712_s6   ;;  %p583_p8 = pnand %p557_p9, %p798_p12 }
  0xb1   : > { %s497_s25 = scalar_lea.sflag [#allocation4], %s496_s24 }
  0xb2   : > { %p584_p10 = pneg %p583_p8 }
  0xb4   : > { %707 = dma.done.wait (%p584_p10), %s497_s25, 1024  }
  0xb5   : > { %709 = vsyncadd (%p584_p10), %s497_s25, 4294966272  ;;  %p14_p1 = scmp.ge.s32.totalorder %s769_s12, 4   ;;  %s983_s6 = smov %s716_s7 }
  0xb6   : > { %s984_s7 = smov %s720_s8  ;;  %s985_s8 = smov %s781_s15 }
  0xb7   : > { %s986_s9 = smov %s769_s12  ;;  %16 = sbr.rel (!%p14_p1) target bundleno = 5 (0x5), region = 76 }
  0xbc   :  { %503 = vsyncpa [#allocation3], 1 }
  0xbd   :  { %505 = vsyncpa [#allocation3 + $0x1], 1 }
  0xbe   :  { %506 = vsyncpa [#allocation4], 1 }
  0xbf   :  { %508 = vsyncpa [#allocation4 + $0x1], 1 }

</bundles_post_ra>
